<compile_context>
chip_gen: v6e
topology: v6e:2x2x1
jax: 0.10.0
libtpu: 0.0.40
codegen_flags: <defaults>
</compile_context>

<pallas_src>
import numpy as np
import jax
import jax.numpy as jnp
from jax.experimental import pallas as pl
from jax.experimental.pallas import tpu as pltpu


_VMEM_LIMIT = 32 * 1024 * 1024  # safe on v5e/v6e/v7x (v7x has 64 MiB/TC)


def _round_up(x, m):
    return ((x + m - 1) // m) * m


def _pick_tm(n_pad):
    # row tile: keep R = n_pad // tm >= 2 so both v7x TensorCores get work
    for c in (512, 256, 128):
        if n_pad % c == 0 and n_pad // c >= 2:
            return c
    return 128


def _pick_tk(n_pad):
    # reduction tile: as large as possible to amortize per-step overhead
    for c in (2048, 1024, 512, 256, 128):
        if n_pad % c == 0:
            return c
    return 128


# ---------------- kernels ----------------

def _conv1_kernel(kstart_ref, kcount_ref, s_ref, x1_ref, w2_ref, b1_ref,
                  out_ref, acc_ref):
    """out = bf16( ReLU(S @ X1 + b1) @ W2 )   where X1 = h0 @ W1  (W1, W2 folded)."""
    i = pl.program_id(0)
    k = pl.program_id(1)

    @pl.when(k == 0)
    def _():
        acc_ref[...] = jnp.zeros_like(acc_ref)

    @pl.when(k < kcount_ref[i])          # skip structurally-zero cross-graph tiles
    def _():
        acc_ref[...] += jnp.dot(s_ref[...], x1_ref[...],
                                preferred_element_type=jnp.float32)

    @pl.when(k == pl.num_programs(1) - 1)
    def _():
        h1 = jnp.maximum(acc_ref[...] + b1_ref[...], 0.0).astype(jnp.bfloat16)
        out_ref[...] = jnp.dot(h1, w2_ref[...],
                               preferred_element_type=jnp.float32).astype(out_ref.dtype)


def _conv2_kernel(kstart_ref, kcount_ref, s_ref, h_ref, b2_ref, out_ref, acc_ref):
    """out = bf16( ReLU(S @ (h1 @ W2) + b2) )  (W2 already applied by conv1)."""
    i = pl.program_id(0)
    k = pl.program_id(1)

    @pl.when(k == 0)
    def _():
        acc_ref[...] = jnp.zeros_like(acc_ref)

    @pl.when(k < kcount_ref[i])
    def _():
        acc_ref[...] += jnp.dot(s_ref[...], h_ref[...],
                                preferred_element_type=jnp.float32)

    @pl.when(k == pl.num_programs(1) - 1)
    def _():
        out_ref[...] = jnp.maximum(acc_ref[...] + b2_ref[...], 0.0).astype(out_ref.dtype)


def _pool_classify_kernel(pool_ref, h2_ref, wc_ref, bc_ref, out_ref, hg_ref):
    """logits = (pool @ h2) @ Wc + bc   (dgl.mean_nodes + Linear, streamed over node tiles)."""
    k = pl.program_id(0)

    @pl.when(k == 0)
    def _():
        hg_ref[...] = jnp.zeros_like(hg_ref)

    hg_ref[...] += jnp.dot(pool_ref[...], h2_ref[...],
                           preferred_element_type=jnp.float32)

    @pl.when(k == pl.num_programs(0) - 1)
    def _():
        out_ref[...] = (jnp.dot(hg_ref[...].astype(jnp.bfloat16), wc_ref[...],
                                preferred_element_type=jnp.float32) + bc_ref[...])


# ---------------- wrapper ----------------

def graph_classifier(S, h0, w1, b1, w2, b2, pool, wc, bc, *, num_nodes=None):
    """Forward pass of GraphClassifier on a batched graph given as dense operators.

    S         : (N, N) normalized adjacency, S[dst, src] (DGL GraphConv norm='both')
    h0        : (N, 1) node features (in-degrees)        -- forward always builds width-1
    pool      : (G, N) mean-pooling operator (dgl.mean_nodes)
    num_nodes : optional python list of per-graph node counts (static metadata) used to
                skip structurally-zero cross-graph tiles of S.
    """
    N = S.shape[0]
    G, C = pool.shape[0], wc.shape[1]
    in_dim, H = w1.shape
    assert in_dim == 1, "forward() builds width-1 node features (in_degrees)"

    N_pad = _round_up(N, 128)          # padding decoupled from tile size
    pad_n = N_pad - N
    tm = _pick_tm(N_pad)
    tk = _pick_tk(N_pad)
    R = N_pad // tm                    # row tiles
    K_tiles = N_pad // tk              # src-node (reduction) tiles

    # ---- per-row-tile K band for the block-diagonal batched-graph S ----
    if num_nodes is not None:
        offs = np.concatenate([[0], np.cumsum(np.asarray(num_nodes, np.int64))])
        raw_start = np.zeros((R,), np.int64)
        raw_count = np.zeros((R,), np.int64)
        for i in range(R):
            r0, r1 = i * tm, min((i + 1) * tm, N)
            lo, hi = None, None
            for g in range(len(num_nodes)):
                g0, g1 = int(offs[g]), int(offs[g + 1])
                if g0 < r1 and g1 > r0:            # graph g intersects row tile i
                    lo = g0 if lo is None else min(lo, g0)
                    hi = g1 if hi is None else max(hi, g1)
            if lo is not None:
                ks = lo // tk
                ke = -(-hi // tk)                   # ceil
                raw_start[i], raw_count[i] = ks, ke - ks
        K_grid = int(max(1, raw_count.max()))
        # shift starts earlier if needed so kstart + K_grid never exceeds K_tiles
        # (out-of-band tiles are exactly zero, so this is always correct)
        kstart_np = np.minimum(raw_start, K_tiles - K_grid)
        kend = raw_start + raw_count
        kcount_np = np.where(raw_count > 0, kend - kstart_np, 0)
    else:
        K_grid = K_tiles
        kstart_np = np.zeros((R,), np.int64)
        kcount_np = np.full((R,), K_tiles, np.int64)

    kstart = jnp.asarray(kstart_np, jnp.int32)
    kcount = jnp.asarray(kcount_np, jnp.int32)

    # ---- operand prep (cast BEFORE padding; callers reusing S should cache this) ----
    S_bf = S.astype(jnp.bfloat16)
    if pad_n:
        S_bf = jnp.pad(S_bf, ((0, pad_n), (0, pad_n)))

    # fold W1 into the node features: (S @ h0) @ W1 == S @ (h0 @ W1)   (in_dim == 1)
    x1 = (h0.astype(jnp.float32) @ jnp.reshape(w1, (1, H)).astype(jnp.float32))
    x1 = x1.astype(jnp.bfloat16)
    if pad_n:
        x1 = jnp.pad(x1, ((0, pad_n), (0, 0)))

    pool_bf = pool.astype(jnp.bfloat16)
    if pad_n:
        pool_bf = jnp.pad(pool_bf, ((0, 0), (0, pad_n)))

    b1f = jnp.reshape(b1, (1, H)).astype(jnp.float32)
    w2bf = w2.astype(jnp.bfloat16)
    b2f = jnp.reshape(b2, (1, H)).astype(jnp.float32)
    wcbf = wc.astype(jnp.bfloat16)
    bcf = jnp.reshape(bc, (1, C)).astype(jnp.float32)

    conv_params = pltpu.CompilerParams(
        dimension_semantics=("parallel", "arbitrary"),   # row tiles shard across TCs (v7x)
        vmem_limit_bytes=_VMEM_LIMIT)

    visited = int(kcount_np.sum())                       # actually-accumulated S tiles
    s_bytes = visited * tm * tk * 2
    x_bytes = visited * tk * H * 2

    # ---- GraphConv 1 : h1w2 = ReLU(S @ X1 + b1) @ W2 ----
    h1w2 = pl.pallas_call(
        _conv1_kernel,
        out_shape=jax.ShapeDtypeStruct((N_pad, H), jnp.bfloat16),
        grid_spec=pltpu.PrefetchScalarGridSpec(
            num_scalar_prefetch=2,
            grid=(R, K_grid),
            in_specs=[
                pl.BlockSpec((tm, tk), lambda i, k, ks, kc: (i, ks[i] + k)),  # S tile (bf16)
                pl.BlockSpec((tk, H), lambda i, k, ks, kc: (ks[i] + k, 0)),   # X1 chunk
                pl.BlockSpec((H, H), lambda i, k, ks, kc: (0, 0)),            # W2
                pl.BlockSpec((1, H), lambda i, k, ks, kc: (0, 0)),            # b1
            ],
            out_specs=pl.BlockSpec((tm, H), lambda i, k, ks, kc: (i, 0)),
            scratch_shapes=[pltpu.VMEM((tm, H), jnp.float32)]),
        compiler_params=conv_params,
        cost_estimate=pl.CostEstimate(
            flops=2 * visited * tm * tk * H + 2 * R * tm * H * H,
            transcendentals=0,
            bytes_accessed=s_bytes + x_bytes + N_pad * H * 2),
    )(kstart, kcount, S_bf, x1, w2bf, b1f)

    # ---- GraphConv 2 : h2 = ReLU(S @ h1w2 + b2) ----
    h2 = pl.pallas_call(
        _conv2_kernel,
        out_shape=jax.ShapeDtypeStruct((N_pad, H), jnp.bfloat16),
        grid_spec=pltpu.PrefetchScalarGridSpec(
            num_scalar_prefetch=2,
            grid=(R, K_grid),
            in_specs=[
                pl.BlockSpec((tm, tk), lambda i, k, ks, kc: (i, ks[i] + k)),  # S tile (bf16)
                pl.BlockSpec((tk, H), lambda i, k, ks, kc: (ks[i] + k, 0)),   # h1w2 chunk
                pl.BlockSpec((1, H), lambda i, k, ks, kc: (0, 0)),            # b2
            ],
            out_specs=pl.BlockSpec((tm, H), lambda i, k, ks, kc: (i, 0)),
            scratch_shapes=[pltpu.VMEM((tm, H), jnp.float32)]),
        compiler_params=conv_params,
        cost_estimate=pl.CostEstimate(
            flops=2 * visited * tm * tk * H,
            transcendentals=0,
            bytes_accessed=s_bytes + x_bytes + N_pad * H * 2),
    )(kstart, kcount, S_bf, h1w2, b2f)

    # ---- mean_nodes + Linear : logits = (pool @ h2) @ Wc + bc ----
    Kp = N_pad // tk
    logits = pl.pallas_call(
        _pool_classify_kernel,
        out_shape=jax.ShapeDtypeStruct((G, C), jnp.float32),
        grid=(Kp,),
        in_specs=[
            pl.BlockSpec((G, tk), lambda k: (0, k)),        # pool chunk (bf16)
            pl.BlockSpec((tk, H), lambda k: (k, 0)),        # h2 chunk (bf16)
            pl.BlockSpec((H, C), lambda k: (0, 0)),         # Wc
            pl.BlockSpec((1, C), lambda k: (0, 0)),         # bc
        ],
        out_specs=pl.BlockSpec((G, C), lambda k: (0, 0)),
        scratch_shapes=[pltpu.VMEM((G, H), jnp.float32)],
        compiler_params=pltpu.CompilerParams(
            dimension_semantics=("arbitrary",),
            vmem_limit_bytes=_VMEM_LIMIT),
        cost_estimate=pl.CostEstimate(
            flops=2 * G * N_pad * H + 2 * G * H * C,
            transcendentals=0,
            bytes_accessed=G * N_pad * 2 + N_pad * H * 2 + G * C * 4),
    )(pool_bf, h2, wcbf, bcf)

    return logits


# ---------------- demo / correctness check ----------------

if __name__ == "__main__":
    # build a small deterministic batched graph (2 graphs, 16 nodes total)
    num_nodes = [10, 6]
    N = sum(num_nodes)
    edges = []
    for i in range(10):                         # graph 0: directed ring + chords
        edges.append((i, (i + 1) % 10))
    edges += [(0, 5), (3, 7)]
    for i in range(6):                          # graph 1 (offset 10): ring + chord
        edges.append((10 + i, 10 + (i + 1) % 6))
    edges.append((10, 13))

    A = np.zeros((N, N), dtype=np.float32)      # A[src, dst]
    for (u, v) in edges:
        A[u, v] += 1.0
    in_deg = A.sum(axis=0)
    out_deg = A.sum(axis=1)
    # DGL GraphConv (norm='both'): h_v = b + sum_{u->v} h_u W / sqrt(clamp(dout_u,1)*clamp(din_v,1))
    dout = np.clip(out_deg, 1.0, None) ** -0.5
    din = np.clip(in_deg, 1.0, None) ** -0.5
    S = (A.T * dout[None, :]) * din[:, None]    # S[dst, src]

    # node features: g.in_degrees().view(-1, 1).float()
    h0 = in_deg.reshape(-1, 1).astype(np.float32)

    # dgl.mean_nodes pooling operator
    pool = np.zeros((len(num_nodes), N), dtype=np.float32)
    off = 0
    for g, n in enumerate(num_nodes):
        pool[g, off:off + n] = 1.0 / n
        off += n

    # deterministic parameters (GraphClassifier(in_dim=1, hidden=32, classes=4))
    in_dim, hidden_dim, n_classes = 1, 32, 4
    key = jax.random.PRNGKey(0)
    k1, k2, k3, k4, k5, k6 = jax.random.split(key, 6)
    w1 = jax.random.normal(k1, (in_dim, hidden_dim), jnp.float32) * 0.5
    b1 = jax.random.normal(k2, (1, hidden_dim), jnp.float32) * 0.1
    w2 = jax.random.normal(k3, (hidden_dim, hidden_dim), jnp.float32) / np.sqrt(hidden_dim)
    b2 = jax.random.normal(k4, (1, hidden_dim), jnp.float32) * 0.1
    wc = jax.random.normal(k5, (hidden_dim, n_classes), jnp.float32) / np.sqrt(hidden_dim)
    bc = jax.random.normal(k6, (1, n_classes), jnp.float32) * 0.1

    Sj, h0j, poolj = jnp.asarray(S), jnp.asarray(h0), jnp.asarray(pool)

    logits = graph_classifier(Sj, h0j, w1, b1, w2, b2, poolj, wc, bc,
                              num_nodes=num_nodes)
    logits = jax.block_until_ready(logits)

    # reference (numpy f32 matmuls with the same bf16 rounding points as the kernels)
    def bf16(x):
        return np.asarray(jnp.asarray(x, jnp.float32).astype(jnp.bfloat16).astype(jnp.float32))

    w1n, b1n = np.asarray(w1), np.asarray(b1)
    w2n, b2n = np.asarray(w2), np.asarray(b2)
    wcn, bcn = np.asarray(wc), np.asarray(bc)

    S_q = bf16(S)
    x1_q = bf16(h0 @ w1n)
    h1 = np.maximum(S_q @ x1_q + b1n, 0.0)
    h1w2_q = bf16(bf16(h1) @ bf16(w2n))
    h2 = bf16(np.maximum(S_q @ h1w2_q + b2n, 0.0))
    hg = bf16(pool) @ h2
    ref = bf16(hg) @ bf16(wcn) + bcn

    assert logits.shape == (len(num_nodes), n_classes)
    assert np.allclose(np.asarray(logits), ref, atol=5e-3, rtol=5e-3), \
        f"max abs err {np.max(np.abs(np.asarray(logits) - ref))}"

    print("KERNEL_OK")
</pallas_src>

<mosaic_0001>
module attributes {stable_mosaic.version = 11 : i64} {
  func.func @_conv1_kernel(%arg0: i32, %arg1: i32, %arg2: memref<1xi32, #tpu.memory_space<smem>>, %arg3: memref<1xi32, #tpu.memory_space<smem>>, %arg4: memref<128x128xbf16, #tpu.memory_space<vmem>>, %arg5: memref<128x32xbf16, #tpu.memory_space<vmem>>, %arg6: memref<32x32xbf16, #tpu.memory_space<vmem>>, %arg7: memref<1x32xf32, #tpu.memory_space<vmem>>, %arg8: memref<128x32xbf16, #tpu.memory_space<vmem>>, %arg9: memref<128x32xf32, #tpu.memory_space<vmem>>) attributes {dimension_semantics = [#tpu.dimension_semantics<parallel>, #tpu.dimension_semantics<arbitrary>], iteration_bounds = array<i64: 1, 1>, scalar_prefetch = 2 : i64, scratch_operands = 1 : i64, tpu.core_type = #tpu.core_type<tc>, window_params = [{transform_indices = @transform_0, window_bounds = array<i64: 128, 128>}, {transform_indices = @transform_1, window_bounds = array<i64: 128, 32>}, {pipeline_mode = #tpu.pipeline_mode<synchronous>, transform_indices = @transform_2, window_bounds = array<i64: 32, 32>}, {pipeline_mode = #tpu.pipeline_mode<synchronous>, transform_indices = @transform_3, window_bounds = array<i64: 1, 32>}, {transform_indices = @transform_4, window_bounds = array<i64: 128, 32>}]} {
    %c0_i32 = arith.constant 0 : i32
    %0 = arith.cmpi eq, %arg1, %c0_i32 : i32
    %1 = arith.extui %0 : i1 to i32
    %c0_i32_0 = arith.constant 0 : i32
    %2 = arith.cmpi ne, %1, %c0_i32_0 : i32
    scf.if %2 {
      %cst = arith.constant 0.000000e+00 : f32
      %11 = vector.broadcast %cst : f32 to vector<128x32xf32>
      %c0 = arith.constant 0 : index
      %c0_4 = arith.constant 0 : index
      %12 = vector.load %arg9[%c0, %c0_4] : memref<128x32xf32, #tpu.memory_space<vmem>>, vector<128x32xf32>
      tpu.vector_store %arg9[%c0, %c0_4], %11 {strides = array<i32>} : memref<128x32xf32, #tpu.memory_space<vmem>>, vector<128x32xf32>,
    } else {
    }
    %3 = arith.index_cast %arg0 : i32 to index
    %4 = memref.load %arg3[%3] : memref<1xi32, #tpu.memory_space<smem>>
    %5 = arith.cmpi slt, %arg1, %4 : i32
    %6 = arith.extui %5 : i1 to i32
    %c0_i32_1 = arith.constant 0 : i32
    %7 = arith.cmpi ne, %6, %c0_i32_1 : i32
    scf.if %7 {
      %c0 = arith.constant 0 : index
      %c0_4 = arith.constant 0 : index
      %11 = vector.load %arg9[%c0, %c0_4] : memref<128x32xf32, #tpu.memory_space<vmem>>, vector<128x32xf32>
      %c0_5 = arith.constant 0 : index
      %c0_6 = arith.constant 0 : index
      %12 = vector.load %arg4[%c0_5, %c0_6] : memref<128x128xbf16, #tpu.memory_space<vmem>>, vector<128x128xbf16>
      %c0_7 = arith.constant 0 : index
      %c0_8 = arith.constant 0 : index
      %13 = vector.load %arg5[%c0_7, %c0_8] : memref<128x32xbf16, #tpu.memory_space<vmem>>, vector<128x32xbf16>
      %cst = arith.constant dense<0.000000e+00> : vector<128x32xf32>
      %14 = tpu.matmul %12, %13, %cst {dimension_numbers = #tpu.dot_dimension_numbers<[1], [0], [0], [1], [0, 0, 1, 1], [], []>} : vector<128x128xbf16>, vector<128x32xbf16>, vector<128x32xf32> -> vector<128x32xf32>
      %15 = arith.addf %11, %14 : vector<128x32xf32>
      %c0_9 = arith.constant 0 : index
      %c0_10 = arith.constant 0 : index
      %16 = vector.load %arg9[%c0_9, %c0_10] : memref<128x32xf32, #tpu.memory_space<vmem>>, vector<128x32xf32>
      tpu.vector_store %arg9[%c0_9, %c0_10], %15 {strides = array<i32>} : memref<128x32xf32, #tpu.memory_space<vmem>>, vector<128x32xf32>,
    } else {
    }
    %c0_i32_2 = arith.constant 0 : i32
    %8 = arith.cmpi eq, %arg1, %c0_i32_2 : i32
    %9 = arith.extui %8 : i1 to i32
    %c0_i32_3 = arith.constant 0 : i32
    %10 = arith.cmpi ne, %9, %c0_i32_3 : i32
    scf.if %10 {
      %c0 = arith.constant 0 : index
      %c0_4 = arith.constant 0 : index
      %11 = vector.load %arg9[%c0, %c0_4] : memref<128x32xf32, #tpu.memory_space<vmem>>, vector<128x32xf32>
      %c0_5 = arith.constant 0 : index
      %c0_6 = arith.constant 0 : index
      %12 = vector.load %arg7[%c0_5, %c0_6] : memref<1x32xf32, #tpu.memory_space<vmem>>, vector<1x32xf32>
      %13 = vector.broadcast %12 : vector<1x32xf32> to vector<128x32xf32>
      %14 = arith.addf %11, %13 : vector<128x32xf32>
      %cst = arith.constant 0.000000e+00 : f32
      %15 = vector.broadcast %cst : f32 to vector<128x32xf32>
      %16 = arith.maximumf %14, %15 : vector<128x32xf32>
      %17 = arith.truncf %16 : vector<128x32xf32> to vector<128x32xbf16>
      %c0_7 = arith.constant 0 : index
      %c0_8 = arith.constant 0 : index
      %18 = vector.load %arg6[%c0_7, %c0_8] : memref<32x32xbf16, #tpu.memory_space<vmem>>, vector<32x32xbf16>
      %cst_9 = arith.constant dense<0.000000e+00> : vector<128x32xf32>
      %19 = tpu.matmul %17, %18, %cst_9 {dimension_numbers = #tpu.dot_dimension_numbers<[1], [0], [0], [1], [0, 0, 1, 1], [], []>} : vector<128x32xbf16>, vector<32x32xbf16>, vector<128x32xf32> -> vector<128x32xf32>
      %20 = arith.truncf %19 : vector<128x32xf32> to vector<128x32xbf16>
      %c0_10 = arith.constant 0 : index
      %c0_11 = arith.constant 0 : index
      %21 = vector.load %arg8[%c0_10, %c0_11] : memref<128x32xbf16, #tpu.memory_space<vmem>>, vector<128x32xbf16>
      tpu.vector_store %arg8[%c0_10, %c0_11], %20 {strides = array<i32>} : memref<128x32xbf16, #tpu.memory_space<vmem>>, vector<128x32xbf16>,
    } else {
    }
    return
  }
  func.func @transform_0(%arg0: i32, %arg1: i32, %arg2: memref<1xi32, #tpu.memory_space<smem>>, %arg3: memref<1xi32, #tpu.memory_space<smem>>) -> (i32, i32) {
    %0 = arith.index_cast %arg0 : i32 to index
    %1 = memref.load %arg2[%0] : memref<1xi32, #tpu.memory_space<smem>>
    %2 = arith.addi %1, %arg1 : i32
    %c0_i32 = arith.constant 0 : i32
    return %arg0, %2 : i32, i32
  }
  func.func @transform_1(%arg0: i32, %arg1: i32, %arg2: memref<1xi32, #tpu.memory_space<smem>>, %arg3: memref<1xi32, #tpu.memory_space<smem>>) -> (i32, i32) {
    %0 = arith.index_cast %arg0 : i32 to index
    %1 = memref.load %arg2[%0] : memref<1xi32, #tpu.memory_space<smem>>
    %2 = arith.addi %1, %arg1 : i32
    %c0_i32 = arith.constant 0 : i32
    %c0_i32_0 = arith.constant 0 : i32
    return %2, %c0_i32 : i32, i32
  }
  func.func @transform_2(%arg0: i32, %arg1: i32, %arg2: memref<1xi32, #tpu.memory_space<smem>>, %arg3: memref<1xi32, #tpu.memory_space<smem>>) -> (i32, i32) {
    %c0_i32 = arith.constant 0 : i32
    %c0_i32_0 = arith.constant 0 : i32
    %c0_i32_1 = arith.constant 0 : i32
    return %c0_i32, %c0_i32_0 : i32, i32
  }
  func.func @transform_3(%arg0: i32, %arg1: i32, %arg2: memref<1xi32, #tpu.memory_space<smem>>, %arg3: memref<1xi32, #tpu.memory_space<smem>>) -> (i32, i32) {
    %c0_i32 = arith.constant 0 : i32
    %c0_i32_0 = arith.constant 0 : i32
    %c0_i32_1 = arith.constant 0 : i32
    return %c0_i32, %c0_i32_0 : i32, i32
  }
  func.func @transform_4(%arg0: i32, %arg1: i32, %arg2: memref<1xi32, #tpu.memory_space<smem>>, %arg3: memref<1xi32, #tpu.memory_space<smem>>) -> (i32, i32) {
    %c0_i32 = arith.constant 0 : i32
    %c0_i32_0 = arith.constant 0 : i32
    return %arg0, %c0_i32 : i32, i32
  }
}

</mosaic_0001>

<bundles_post_ra>
// kernel: tpu_custom_call.1
= control target key start
LH: loop header
LB: loop body
LE: loop exit
PB: predicated region body
PF: predicated region fallthrough
CT: control target
= control target key end

     0   :  { %vm75_vm0 = vcmask 261120   ;;  %v853_v0 = vmov 0.0   ;;  %s1044_s0 = inlined_call_operand.<no memory space> [shape: s32[1], index: 0, kind: input, shape index: {}]   ;;  %s1045_s1 = inlined_call_operand.<no memory space> [shape: s32[1], index: 1, kind: input, shape index: {}]   ;;  %s1046_s4 = inlined_call_operand.vmem [shape: bf16[32,32], index: 4, kind: input, shape index: {}]   ;;  %s1047_s5 = inlined_call_operand.vmem [shape: f32[1,32], index: 5, kind: input, shape index: {}]   ;;  %s1048_s6 = inlined_call_operand.vmem [shape: bf16[128,32], index: 6, kind: output, shape index: {}]   ;;  %s1049_s2 = inlined_call_operand.vmem [shape: bf16[128,128], index: 2, kind: input, shape index: {}]   ;;  %s1050_s3 = inlined_call_operand.vmem [shape: bf16[128,32], index: 3, kind: input, shape index: {}]  }
   0x1   :  { %p54_p0 = scmp.lt.s32.totalorder %s1044_s0, 0  ;;  %s673_s25 = sshll.u32 %s1044_s0, 4  ;;  %76 = vst.msk [vmem:[#allocation2] sm:$0xff] %vm75_vm0, %v853_v0  ;;  %77 = vst.msk [vmem:[#allocation2 + $0x8] sm:$0xff] %vm75_vm0, %v853_v0 }
   0x2   :  { %78 = vst.msk [vmem:[#allocation2 + $0x10] sm:$0xff] %vm75_vm0, %v853_v0  ;;  %79 = vst.msk [vmem:[#allocation2 + $0x18] sm:$0xff] %vm75_vm0, %v853_v0  ;;  %p63_p1 = scmp.lt.s32.totalorder %s673_s25, 15  ;;  %p676_p2 = scmp.le.s32.totalorder %s1045_s1, 0 }
   0x3   :  { %80 = vst.msk [vmem:[#allocation2 + $0x20] sm:$0xff] %vm75_vm0, %v853_v0  ;;  %81 = vst.msk [vmem:[#allocation2 + $0x28] sm:$0xff] %vm75_vm0, %v853_v0  ;;  %s1052_s0 = smov (!%p54_p0, %s1044_s0), 0 }
   0x4   :  { %82 = vst.msk [vmem:[#allocation2 + $0x30] sm:$0xff] %vm75_vm0, %v853_v0  ;;  %83 = vst.msk [vmem:[#allocation2 + $0x38] sm:$0xff] %vm75_vm0, %v853_v0  ;;  %s1054_s25 = smov (!%p63_p1, %s673_s25), 15  ;;  %s672_s30 = sshll.u32 %s1052_s0, 2 }
   0x5   :  { %84 = vst.msk [vmem:[#allocation2 + $0x40] sm:$0xff] %vm75_vm0, %v853_v0  ;;  %85 = vst.msk [vmem:[#allocation2 + $0x48] sm:$0xff] %vm75_vm0, %v853_v0  ;;  %s921_s9 = scalar_lea.vmem %s1049_s2, %s672_s30  ;;  %s674_s10 = sshll.u32 %s1054_s25, 2 }
   0x6   :  { %86 = vst.msk [vmem:[#allocation2 + $0x50] sm:$0xff] %vm75_vm0, %v853_v0  ;;  %87 = vst.msk [vmem:[#allocation2 + $0x58] sm:$0xff] %vm75_vm0, %v853_v0  ;;  %s926_s13 = scalar_lea.vmem %s1050_s3, %s674_s10  ;;  %96 = sbr.rel (%p676_p2) target bundleno = 254 (0xfe), region = 25 }
   0x7   :  { %88 = vst.msk [vmem:[#allocation2 + $0x60] sm:$0xff] %vm75_vm0, %v853_v0  ;;  %89 = vst.msk [vmem:[#allocation2 + $0x68] sm:$0xff] %vm75_vm0, %v853_v0 }
   0x8   :  { %90 = vst.msk [vmem:[#allocation2 + $0x70] sm:$0xff] %vm75_vm0, %v853_v0  ;;  %91 = vst.msk [vmem:[#allocation2 + $0x78] sm:$0xff] %vm75_vm0, %v853_v0 }
   0xb   :  { %v835_v1 = vld [vmem:[%s926_s13 + $0x38] sm:$0xff]   ;;  %v836_v2 = vld [vmem:[%s926_s13 + $0x30] sm:$0xff]   ;;  %v837_v3 = vld [vmem:[%s926_s13 + $0x28] sm:$0xff]  }
   0xc   :  { %762 = vmatprep.subr.bf16.mxu0 %v835_v1  ;;  %814 = vmatprep.subr.bf16.mxu1 %v835_v1  ;;  %v838_v4 = vld [vmem:[%s926_s13 + $0x20] sm:$0xff]   ;;  %v839_v7 = vld [vmem:[%s926_s13 + $0x18] sm:$0xff]   ;;  %v840_v8 = vld [vmem:[%s926_s13 + $0x10] sm:$0xff]  }
   0xd   :  { %763 = vmatpush3.bf16.msra.mxu0 %v835_v1  ;;  %822 = vmatpush3.bf16.msra.mxu1 %v835_v1  ;;  %v843_v5 = vld [vmem:[%s921_s9] sm:$0xff]   ;;  %v841_v9 = vld [vmem:[%s926_s13 + $0x8] sm:$0xff]   ;;  %v847_v13 = vld [vmem:[%s921_s9 + $0x10] sm:$0xff]  }
   0xe   :  { %764 = vmatprep.subr.bf16.mxu0 %v836_v2  ;;  %815 = vmatprep.subr.bf16.mxu1 %v836_v2  ;;  %v844_v6 = vld [vmem:[%s921_s9 + $0x20] sm:$0xff]   ;;  %v845_v11 = vld [vmem:[%s921_s9 + $0x8] sm:$0xff]   ;;  %v848_v14 = vld [vmem:[%s921_s9 + $0x30] sm:$0xff]  }
   0xf   :  { %778 = vmatprep.mubr.bf16.mxu0 %v843_v5  ;;  %786 = vmatprep.mubr.bf16.mxu1 %v844_v6  ;;  %v842_v10 = vld [vmem:[%s926_s13] sm:$0xff]   ;;  %v846_v12 = vld [vmem:[%s921_s9 + $0x28] sm:$0xff]   ;;  %v849_v15 = vld [vmem:[%s921_s9 + $0x18] sm:$0xff]  }
  0x10   :  { %v850_v16 = vld [vmem:[%s921_s9 + $0x38] sm:$0xff]   ;;  %v99_v17 = vld [vmem:[#allocation2 + $0x10] sm:$0xff]  ;;  %v97_v21 = vld [vmem:[#allocation2] sm:$0xff] }
  0x11   :  { %765 = vmatpush3.bf16.msra.mxu0 %v836_v2  ;;  %823 = vmatpush3.bf16.msra.mxu1 %v836_v2  ;;  %v107_v18 = vld [vmem:[#allocation2 + $0x50] sm:$0xff]  ;;  %v105_v22 = vld [vmem:[#allocation2 + $0x40] sm:$0xff]  ;;  %v100_v27 = vld [vmem:[#allocation2 + $0x18] sm:$0xff] }
  0x12   :  { %766 = vmatprep.subr.bf16.mxu0 %v837_v3  ;;  %816 = vmatprep.subr.bf16.mxu1 %v837_v3  ;;  %v108_v28 = vld [vmem:[#allocation2 + $0x58] sm:$0xff]  ;;  %v98_v33 = vld [vmem:[#allocation2 + $0x8] sm:$0xff]  ;;  %v103_v39 = vld [vmem:[#allocation2 + $0x30] sm:$0xff] }
  0x13   :  { %v106_v34 = vld [vmem:[#allocation2 + $0x48] sm:$0xff]  ;;  %v111_v40 = vld [vmem:[#allocation2 + $0x70] sm:$0xff]  ;;  %v101_v45 = vld [vmem:[#allocation2 + $0x20] sm:$0xff] }
  0x14   :  { %v109_v46 = vld [vmem:[#allocation2 + $0x60] sm:$0xff]  ;;  %v104_v51 = vld [vmem:[#allocation2 + $0x38] sm:$0xff]  ;;  %v102_v57 = vld [vmem:[#allocation2 + $0x28] sm:$0xff] }
  0x15   :  { %767 = vmatpush3.bf16.msra.mxu0 %v837_v3  ;;  %824 = vmatpush3.bf16.msra.mxu1 %v837_v3  ;;  %v112_v52 = vld [vmem:[#allocation2 + $0x78] sm:$0xff]  ;;  %v110_v58 = vld [vmem:[#allocation2 + $0x68] sm:$0xff] }
  0x16   :  { %768 = vmatprep.subr.bf16.mxu0 %v838_v4  ;;  %817 = vmatprep.subr.bf16.mxu1 %v838_v4 }
  0x19   :  { %769 = vmatpush3.bf16.msra.mxu0 %v838_v4  ;;  %825 = vmatpush3.bf16.msra.mxu1 %v838_v4 }
  0x1a   :  { %770 = vmatprep.subr.bf16.mxu0 %v839_v7  ;;  %818 = vmatprep.subr.bf16.mxu1 %v839_v7 }
  0x1d   :  { %771 = vmatpush3.bf16.msra.mxu0 %v839_v7  ;;  %826 = vmatpush3.bf16.msra.mxu1 %v839_v7 }
  0x1e   :  { %772 = vmatprep.subr.bf16.mxu0 %v840_v8  ;;  %819 = vmatprep.subr.bf16.mxu1 %v840_v8 }
  0x21   :  { %773 = vmatpush3.bf16.msra.mxu0 %v840_v8  ;;  %827 = vmatpush3.bf16.msra.mxu1 %v840_v8 }
  0x22   :  { %774 = vmatprep.subr.bf16.mxu0 %v841_v9  ;;  %820 = vmatprep.subr.bf16.mxu1 %v841_v9 }
  0x25   :  { %775 = vmatpush3.bf16.msra.mxu0 %v841_v9  ;;  %828 = vmatpush3.bf16.msra.mxu1 %v841_v9 }
  0x26   :  { %776 = vmatprep.subr.bf16.mxu0 %v842_v10  ;;  %821 = vmatprep.subr.bf16.mxu1 %v842_v10 }
  0x29   :  { %777 = vmatpush3.bf16.msra.mxu0 %v842_v10  ;;  %829 = vmatpush3.bf16.msra.mxu1 %v842_v10 }
  0x2c   :  { %779 = vmatmul.mubr.bf16.vlgmr.msra.gmra.mxu0 %v845_v11  ;;  %787 = vmatmul.mubr.bf16.vlgmr.msra.gmra.mxu1 %v846_v12 }
  0x2d   :  { %782 = vmatprep.mubr.bf16.mxu0 %v847_v13  ;;  %790 = vmatprep.mubr.bf16.mxu1 %v848_v14 }
  0x34   :  { %783 = vmatmul.mubr.bf16.gmra.mxu0 %v849_v15  ;;  %791 = vmatmul.mubr.bf16.gmra.mxu1 %v850_v16 }
  0xec   :  { %v780_v19 = vpop.f32.mrf.mxu0  ;;  %v788_v20 = vpop.f32.mrf.mxu1 }
  0xed   :  { %v340_v23 = vadd.f32 %v780_v19, %v99_v17  ;;  %v348_v24 = vadd.f32 %v788_v20, %v107_v18 }
  0xee   :  { %v275_v25 = vpop.f32.mrf.mxu0  ;;  %v307_v26 = vpop.f32.mrf.mxu1 }
  0xef   :  { %357 = vst.msk [vmem:[#allocation2 + $0x10] sm:$0xff] %vm75_vm0, %v340_v23  ;;  %365 = vst.msk [vmem:[#allocation2 + $0x50] sm:$0xff] %vm75_vm0, %v348_v24  ;;  %v338_v29 = vadd.f32 %v275_v25, %v97_v21  ;;  %v346_v30 = vadd.f32 %v307_v26, %v105_v22 }
  0xf0   :  { %v781_v31 = vpop.f32.mrf.mxu0  ;;  %v789_v32 = vpop.f32.mrf.mxu1 }
  0xf1   :  { %355 = vst.msk [vmem:[#allocation2] sm:$0xff] %vm75_vm0, %v338_v29  ;;  %363 = vst.msk [vmem:[#allocation2 + $0x40] sm:$0xff] %vm75_vm0, %v346_v30  ;;  %v341_v35 = vadd.f32 %v781_v31, %v100_v27  ;;  %v349_v36 = vadd.f32 %v789_v32, %v108_v28 }
  0xf2   :  { %v278_v37 = vpop.f32.mrf.mxu0  ;;  %v310_v38 = vpop.f32.mrf.mxu1 }
  0xf3   :  { %358 = vst.msk [vmem:[#allocation2 + $0x18] sm:$0xff] %vm75_vm0, %v341_v35  ;;  %366 = vst.msk [vmem:[#allocation2 + $0x58] sm:$0xff] %vm75_vm0, %v349_v36  ;;  %v339_v41 = vadd.f32 %v278_v37, %v98_v33  ;;  %v347_v42 = vadd.f32 %v310_v38, %v106_v34 }
  0xf4   :  { %v784_v43 = vpop.f32.mrf.mxu0  ;;  %v792_v44 = vpop.f32.mrf.mxu1 }
  0xf5   :  { %356 = vst.msk [vmem:[#allocation2 + $0x8] sm:$0xff] %vm75_vm0, %v339_v41  ;;  %364 = vst.msk [vmem:[#allocation2 + $0x48] sm:$0xff] %vm75_vm0, %v347_v42  ;;  %v344_v47 = vadd.f32 %v784_v43, %v103_v39  ;;  %v352_v48 = vadd.f32 %v792_v44, %v111_v40 }
  0xf6   :  { %v291_v49 = vpop.f32.mrf.mxu0  ;;  %v323_v50 = vpop.f32.mrf.mxu1 }
  0xf7   :  { %361 = vst.msk [vmem:[#allocation2 + $0x30] sm:$0xff] %vm75_vm0, %v344_v47  ;;  %369 = vst.msk [vmem:[#allocation2 + $0x70] sm:$0xff] %vm75_vm0, %v352_v48  ;;  %v342_v53 = vadd.f32 %v291_v49, %v101_v45  ;;  %v350_v54 = vadd.f32 %v323_v50, %v109_v46 }
  0xf8   :  { %v785_v55 = vpop.f32.mrf.mxu0  ;;  %v793_v56 = vpop.f32.mrf.mxu1 }
  0xf9   :  { %359 = vst.msk [vmem:[#allocation2 + $0x20] sm:$0xff] %vm75_vm0, %v342_v53  ;;  %367 = vst.msk [vmem:[#allocation2 + $0x60] sm:$0xff] %vm75_vm0, %v350_v54  ;;  %v345_v59 = vadd.f32 %v785_v55, %v104_v51  ;;  %v353_v60 = vadd.f32 %v793_v56, %v112_v52 }
  0xfa   :  { %v294_v61 = vpop.f32.mrf.mxu0  ;;  %v326_v62 = vpop.f32.mrf.mxu1 }
  0xfb   :  { %362 = vst.msk [vmem:[#allocation2 + $0x38] sm:$0xff] %vm75_vm0, %v345_v59  ;;  %370 = vst.msk [vmem:[#allocation2 + $0x78] sm:$0xff] %vm75_vm0, %v353_v60  ;;  %v343_v63 = vadd.f32 %v294_v61, %v102_v57  ;;  %v351_v0 = vadd.f32 %v326_v62, %v110_v58 }
  0xfd   :  { %360 = vst.msk [vmem:[#allocation2 + $0x28] sm:$0xff] %vm75_vm0, %v343_v63  ;;  %368 = vst.msk [vmem:[#allocation2 + $0x68] sm:$0xff] %vm75_vm0, %v351_v0 }
  0xfe PF:  { %v851_v1 = vld [vmem:[%s1046_s4 + $0x8] sm:$0xff]   ;;  %v852_v2 = vld [vmem:[%s1046_s4] sm:$0xff]   ;;  %v376_v10 = vld [vmem:[#allocation2 + $0x10] sm:$0xff]  ;;  %vm639_vm1 = vcmask 257024  }
  0xff   :  { %794 = vmatprep.subr.bf16.mxu0 %v851_v1  ;;  %830 = vmatprep.subr.bf16.mxu1 %v851_v1  ;;  %v374_v3 = vld [vmem:[#allocation2] sm:$0xff]  ;;  %v375_v4 = vld [vmem:[#allocation2 + $0x8] sm:$0xff]  ;;  %v377_v13 = vld [vmem:[#allocation2 + $0x18] sm:$0xff] }
 0x100   :  { %v693_v5 = vld [vmem:[%s1047_s5] ss:$0 sm:$0xff]  ;;  %795 = vmatpush3.bf16.msra.mxu0 %v851_v1  ;;  %832 = vmatpush3.bf16.msra.mxu1 %v851_v1  ;;  %v383_v9 = vld [vmem:[#allocation2 + $0x48] sm:$0xff]  ;;  %v384_v15 = vld [vmem:[#allocation2 + $0x50] sm:$0xff] }
 0x101   :  { %v397_v6 = vadd.f32 %v693_v5, %v374_v3  ;;  %v398_v7 = vadd.f32 %v693_v5, %v375_v4  ;;  %v382_v8 = vld [vmem:[#allocation2 + $0x40] sm:$0xff]  ;;  %796 = vmatprep.subr.bf16.mxu0 %v852_v2  ;;  %831 = vmatprep.subr.bf16.mxu1 %v852_v2  ;;  %v406_v12 = vadd.f32 %v693_v5, %v383_v9  ;;  %v385_v16 = vld [vmem:[#allocation2 + $0x58] sm:$0xff]  ;;  %v380_v29 = vld [vmem:[#allocation2 + $0x30] sm:$0xff] }
 0x102   :  { %v405_v11 = vadd.f32 %v693_v5, %v382_v8  ;;  %v399_v14 = vadd.f32 %v693_v5, %v376_v10  ;;  %v400_v19 = vadd.f32 %v693_v5, %v377_v13  ;;  %v407_v20 = vadd.f32 %v693_v5, %v384_v15  ;;  %v378_v21 = vld [vmem:[#allocation2 + $0x20] sm:$0xff]  ;;  %v381_v34 = vld [vmem:[#allocation2 + $0x38] sm:$0xff]  ;;  %v388_v39 = vld [vmem:[#allocation2 + $0x70] sm:$0xff] }
 0x103   :  { %v413_v17 = vmax.f32 %v397_v6, 0.0  ;;  %v414_v18 = vmax.f32 %v398_v7, 0.0  ;;  %v386_v23 = vld [vmem:[#allocation2 + $0x60] sm:$0xff]  ;;  %v422_v25 = vmax.f32 %v406_v12, 0.0  ;;  %v408_v27 = vadd.f32 %v693_v5, %v385_v16  ;;  %v389_v40 = vld [vmem:[#allocation2 + $0x78] sm:$0xff] }
 0x104   :  { %v379_v22 = vld [vmem:[#allocation2 + $0x28] sm:$0xff]  ;;  %v421_v24 = vmax.f32 %v405_v11, 0.0  ;;  %v415_v26 = vmax.f32 %v399_v14, 0.0  ;;  %797 = vmatpush3.bf16.msra.mxu0 %v852_v2  ;;  %833 = vmatpush3.bf16.msra.mxu1 %v852_v2  ;;  %v416_v31 = vmax.f32 %v400_v19, 0.0  ;;  %v423_v32 = vmax.f32 %v407_v20, 0.0 }
 0x105   :  { %v387_v28 = vld [vmem:[#allocation2 + $0x68] sm:$0xff]  ;;  %v429_v30 = vpack.c.bf16 %v414_v18, %v413_v17  ;;  %v401_v33 = vadd.f32 %v693_v5, %v378_v21  ;;  %v424_v36 = vmax.f32 %v408_v27, 0.0  ;;  %v402_v37 = vadd.f32 %v693_v5, %v379_v22 }
 0x106   :  { %v433_v35 = vpack.c.bf16 %v422_v25, %v421_v24  ;;  %v409_v38 = vadd.f32 %v693_v5, %v386_v23  ;;  %v430_v41 = vpack.c.bf16 %v416_v31, %v415_v26  ;;  %v410_v43 = vadd.f32 %v693_v5, %v387_v28 }
 0x107   :  { %798 = vmatprep.mubr.msk.bf16.mxu0 %vm75_vm0, %v429_v30  ;;  %v417_v42 = vmax.f32 %v401_v33, 0.0  ;;  %v403_v44 = vadd.f32 %v693_v5, %v380_v29  ;;  %v434_v45 = vpack.c.bf16 %v424_v36, %v423_v32  ;;  %v418_v46 = vmax.f32 %v402_v37, 0.0 }
 0x108   :  { %806 = vmatprep.mubr.msk.bf16.mxu1 %vm75_vm0, %v433_v35  ;;  %v425_v47 = vmax.f32 %v409_v38, 0.0  ;;  %v404_v48 = vadd.f32 %v693_v5, %v381_v34  ;;  %799 = vmatmul.mubr.msk.bf16.vlgmr.msra.gmra.mxu0 %vm75_vm0, %v430_v41  ;;  %v426_v49 = vmax.f32 %v410_v43, 0.0  ;;  %v411_v51 = vadd.f32 %v693_v5, %v388_v39 }
 0x109   :  { %v419_v50 = vmax.f32 %v403_v44, 0.0  ;;  %v412_v52 = vadd.f32 %v693_v5, %v389_v40  ;;  %807 = vmatmul.mubr.msk.bf16.vlgmr.msra.gmra.mxu1 %vm75_vm0, %v434_v45  ;;  %v431_v53 = vpack.c.bf16 %v418_v46, %v417_v42 }
 0x10a   :  { %v420_v54 = vmax.f32 %v404_v48, 0.0  ;;  %v435_v55 = vpack.c.bf16 %v426_v49, %v425_v47  ;;  %v427_v56 = vmax.f32 %v411_v51, 0.0 }
 0x10b   :  { %v428_v57 = vmax.f32 %v412_v52, 0.0  ;;  %802 = vmatprep.mubr.msk.bf16.mxu0 %vm75_vm0, %v431_v53 }
 0x10c   :  { %810 = vmatprep.mubr.msk.bf16.mxu1 %vm75_vm0, %v435_v55  ;;  %v432_v58 = vpack.c.bf16 %v420_v54, %v419_v50 }
 0x10d   :  { %v436_v59 = vpack.c.bf16 %v428_v57, %v427_v56 }
 0x110   :  { %803 = vmatmul.mubr.msk.bf16.gmra.mxu0 %vm75_vm0, %v432_v58 }
 0x111   :  { %811 = vmatmul.mubr.msk.bf16.gmra.mxu1 %vm75_vm0, %v436_v59 }
 0x1c8   :  { %v800_v60 = vpop.f32.mrf.mxu0 }
 0x1c9   :  { %v722_v61 = vpack.c.bf16 %v800_v60, %v800_v60  ;;  %v808_v62 = vpop.f32.mrf.mxu1 }
 0x1ca   :  { %v730_v63 = vpack.c.bf16 %v808_v62, %v808_v62  ;;  %v512_v0 = vpop.f32.mrf.mxu0 }
 0x1cb   :  { %642 = vst.msk [vmem:[%s1048_s6 + $0x8] sm:$0xf] %vm639_vm1, %v722_v61  ;;  %v720_v1 = vpack.c.bf16 %v512_v0, %v512_v0  ;;  %v544_v2 = vpop.f32.mrf.mxu1 }
 0x1cc   :  { %650 = vst.msk [vmem:[%s1048_s6 + $0x28] sm:$0xf] %vm639_vm1, %v730_v63  ;;  %v728_v3 = vpack.c.bf16 %v544_v2, %v544_v2  ;;  %v801_v4 = vpop.f32.mrf.mxu0 }
 0x1cd   :  { %640 = vst.msk [vmem:[%s1048_s6] sm:$0xf] %vm639_vm1, %v720_v1  ;;  %v723_v5 = vpack.c.bf16 %v801_v4, %v801_v4  ;;  %v809_v6 = vpop.f32.mrf.mxu1 }
 0x1ce   :  { %648 = vst.msk [vmem:[%s1048_s6 + $0x20] sm:$0xf] %vm639_vm1, %v728_v3  ;;  %v731_v7 = vpack.c.bf16 %v809_v6, %v809_v6  ;;  %v515_v8 = vpop.f32.mrf.mxu0 }
 0x1cf   :  { %643 = vst.msk [vmem:[%s1048_s6 + $0xc] sm:$0xf] %vm639_vm1, %v723_v5  ;;  %v721_v9 = vpack.c.bf16 %v515_v8, %v515_v8  ;;  %v547_v10 = vpop.f32.mrf.mxu1 }
 0x1d0   :  { %651 = vst.msk [vmem:[%s1048_s6 + $0x2c] sm:$0xf] %vm639_vm1, %v731_v7  ;;  %v729_v11 = vpack.c.bf16 %v547_v10, %v547_v10  ;;  %v804_v12 = vpop.f32.mrf.mxu0 }
 0x1d1   :  { %641 = vst.msk [vmem:[%s1048_s6 + $0x4] sm:$0xf] %vm639_vm1, %v721_v9  ;;  %v726_v13 = vpack.c.bf16 %v804_v12, %v804_v12  ;;  %v812_v14 = vpop.f32.mrf.mxu1 }
 0x1d2   :  { %649 = vst.msk [vmem:[%s1048_s6 + $0x24] sm:$0xf] %vm639_vm1, %v729_v11  ;;  %v734_v15 = vpack.c.bf16 %v812_v14, %v812_v14  ;;  %v528_v16 = vpop.f32.mrf.mxu0 }
 0x1d3   :  { %646 = vst.msk [vmem:[%s1048_s6 + $0x18] sm:$0xf] %vm639_vm1, %v726_v13  ;;  %v724_v17 = vpack.c.bf16 %v528_v16, %v528_v16  ;;  %v560_v18 = vpop.f32.mrf.mxu1 }
 0x1d4   :  { %654 = vst.msk [vmem:[%s1048_s6 + $0x38] sm:$0xf] %vm639_vm1, %v734_v15  ;;  %v732_v19 = vpack.c.bf16 %v560_v18, %v560_v18  ;;  %v805_v20 = vpop.f32.mrf.mxu0 }
 0x1d5   :  { %644 = vst.msk [vmem:[%s1048_s6 + $0x10] sm:$0xf] %vm639_vm1, %v724_v17  ;;  %v727_v21 = vpack.c.bf16 %v805_v20, %v805_v20  ;;  %v813_v22 = vpop.f32.mrf.mxu1 }
 0x1d6   :  { %652 = vst.msk [vmem:[%s1048_s6 + $0x30] sm:$0xf] %vm639_vm1, %v732_v19  ;;  %v735_v23 = vpack.c.bf16 %v813_v22, %v813_v22  ;;  %v531_v24 = vpop.f32.mrf.mxu0 }
 0x1d7   :  { %647 = vst.msk [vmem:[%s1048_s6 + $0x1c] sm:$0xf] %vm639_vm1, %v727_v21  ;;  %v725_v25 = vpack.c.bf16 %v531_v24, %v531_v24  ;;  %v563_v26 = vpop.f32.mrf.mxu1 }
 0x1d8   :  { %655 = vst.msk [vmem:[%s1048_s6 + $0x3c] sm:$0xf] %vm639_vm1, %v735_v23  ;;  %v733_v27 = vpack.c.bf16 %v563_v26, %v563_v26 }
 0x1d9   :  { %645 = vst.msk [vmem:[%s1048_s6 + $0x14] sm:$0xf] %vm639_vm1, %v725_v25 }
 0x1da   :  { %653 = vst.msk [vmem:[%s1048_s6 + $0x34] sm:$0xf] %vm639_vm1, %v733_v27 }

</bundles_post_ra>
